<compile_context>
chip_gen: v7x
topology: tpu7x:2x2x1
jax: 0.10.0
libtpu: 0.0.40
codegen_flags: <defaults>
</compile_context>

<pallas_src>
import jax
import jax.numpy as jnp
from jax.experimental import pallas as pl
from jax.experimental.pallas import tpu as pltpu


def _insert_kernel(alpha_ref, v_ref, x_ref, o_ref):
    # alpha_ref: (1, 1) f32 in SMEM; v_ref: (1, D); x_ref/o_ref: (TILE_N, D).
    alpha = alpha_ref[0, 0]

    v = v_ref[...].astype(jnp.float32)                            # (1, D)
    inv_norm = jax.lax.rsqrt(jnp.sum(v * v, axis=-1, keepdims=True))
    r_hat = v * inv_norm                                          # (1, D), unit vector

    x = x_ref[...].astype(jnp.float32)                            # (TILE_N, D)
    dot = jnp.sum(x * r_hat, axis=-1, keepdims=True)              # (TILE_N, 1) lane reduce
    o_ref[...] = (x + dot * (alpha * r_hat)).astype(o_ref.dtype)  # rank-1 update


def _choose_tile_rows(n_rows, d, itemsize, target_bytes=2 * 1024 * 1024, max_rows=4096):
    """Largest sublane-aligned row tile ~target_bytes that does not exceed N."""
    sublane = {4: 8, 2: 16, 1: 32}.get(int(itemsize), 8)
    if n_rows <= sublane:
        # Single block equal to the full row extent (allowed even if not a
        # multiple of 8 because it equals the full array dim).
        return n_rows
    rows = max(sublane, target_bytes // max(1, d * itemsize))
    rows = min(rows, max_rows)
    rows = (rows // sublane) * sublane
    rows = min(rows, (n_rows // sublane) * sublane)
    return max(rows, sublane)


def insert_layer(x, vector, alpha):
    """Applies x + alpha * (r_hat r_hat^T) x along the last dim of x."""
    orig_shape = x.shape
    D = orig_shape[-1]
    x2d = x.reshape(-1, D)
    N = x2d.shape[0]
    v2d = vector.reshape(1, D)
    alpha_arr = jnp.asarray(alpha, dtype=jnp.float32).reshape(1, 1)

    tile_rows = _choose_tile_rows(N, D, x2d.dtype.itemsize)
    grid = (pl.cdiv(N, tile_rows),)

    # Double-buffered input + output blocks (+ v + headroom); generous but
    # well under v7x's 64 MiB physical VMEM and the scoped defaults elsewhere.
    block_bytes = tile_rows * D * x2d.dtype.itemsize
    vmem_limit = int(min(48 * 1024 * 1024,
                         max(16 * 1024 * 1024, 6 * block_bytes + (1 << 20))))

    out = pl.pallas_call(
        _insert_kernel,
        out_shape=jax.ShapeDtypeStruct((N, D), x.dtype),
        grid=grid,
        in_specs=[
            pl.BlockSpec(memory_space=pltpu.MemorySpace.SMEM),     # alpha scalar
            pl.BlockSpec((1, D), lambda i: (0, 0)),                # vector
            pl.BlockSpec((tile_rows, D), lambda i: (i, 0)),        # x row tile
        ],
        out_specs=pl.BlockSpec((tile_rows, D), lambda i: (i, 0)),
        input_output_aliases={2: 0},                               # x aliases output
        compiler_params=pltpu.CompilerParams(
            dimension_semantics=("parallel",),                     # megacore on v7x
            vmem_limit_bytes=vmem_limit,
        ),
    )(alpha_arr, v2d, x2d)
    return out.reshape(orig_shape)


if __name__ == "__main__":
    key = jax.random.PRNGKey(0)
    kx, kv = jax.random.split(key)

    B, S, D = 2, 8, 32
    alpha = 0.5

    x = jax.random.normal(kx, (B, S, D), dtype=jnp.float32)
    vector = jax.random.normal(kv, (D,), dtype=jnp.float32)

    # Pure-JAX reference (computed before the kernel; kernel aliases its input).
    r_hat = vector / jnp.linalg.norm(vector, axis=-1, keepdims=True)
    proj = jnp.einsum("bsd,d->bs", x, r_hat)[..., None] * r_hat
    ref = jax.block_until_ready(x + alpha * proj)

    out = insert_layer(x, vector, alpha)
    out = jax.block_until_ready(out)
    assert jnp.allclose(out, ref, atol=1e-5, rtol=1e-5), "mismatch vs reference"

    # Non-divisible row-count check (partial last tile is masked correctly).
    x2 = jax.random.normal(kx, (3, 5, D), dtype=jnp.float32)
    proj2 = jnp.einsum("bsd,d->bs", x2, r_hat)[..., None] * r_hat
    ref2 = jax.block_until_ready(x2 + alpha * proj2)
    out2 = jax.block_until_ready(insert_layer(x2, vector, alpha))
    assert jnp.allclose(out2, ref2, atol=1e-5, rtol=1e-5), "mismatch (ragged N)"

    print("KERNEL_OK")
</pallas_src>

<mosaic_0001>
module attributes {stable_mosaic.version = 11 : i64} {
  func.func @_insert_kernel(%arg0: i32, %arg1: memref<1x1xf32, #tpu.memory_space<smem>>, %arg2: memref<1x32xf32, #tpu.memory_space<vmem>>, %arg3: memref<16x32xf32, #tpu.memory_space<vmem>>, %arg4: memref<16x32xf32, #tpu.memory_space<vmem>>) attributes {dimension_semantics = [#tpu.dimension_semantics<parallel>], iteration_bounds = array<i64: 1>, scalar_prefetch = 0 : i64, scratch_operands = 0 : i64, tpu.core_type = #tpu.core_type<tc>, window_params = [{transform_indices = @transform_0, window_bounds = array<i64: 1, 1>}, {pipeline_mode = #tpu.pipeline_mode<synchronous>, transform_indices = @transform_1, window_bounds = array<i64: 1, 32>}, {transform_indices = @transform_2, window_bounds = array<i64: 16, 32>}, {transform_indices = @transform_3, window_bounds = array<i64: 16, 32>}]} {
    %c0 = arith.constant 0 : index
    %c0_0 = arith.constant 0 : index
    %0 = memref.load %arg1[%c0, %c0_0] : memref<1x1xf32, #tpu.memory_space<smem>>
    %c0_1 = arith.constant 0 : index
    %c0_2 = arith.constant 0 : index
    %1 = vector.load %arg2[%c0_1, %c0_2] : memref<1x32xf32, #tpu.memory_space<vmem>>, vector<1x32xf32>
    %2 = arith.mulf %1, %1 : vector<1x32xf32>
    %cst = arith.constant dense<0.000000e+00> : vector<1xf32>
    %3 = vector.multi_reduction <add>, %2, %cst [1] : vector<1x32xf32> to vector<1xf32>
    %4 = vector.shape_cast %3 : vector<1xf32> to vector<1x1xf32>
    %5 = math.rsqrt %4 : vector<1x1xf32>
    %6 = vector.broadcast %5 : vector<1x1xf32> to vector<1x32xf32>
    %7 = arith.mulf %1, %6 : vector<1x32xf32>
    %c0_3 = arith.constant 0 : index
    %c0_4 = arith.constant 0 : index
    %8 = vector.load %arg3[%c0_3, %c0_4] : memref<16x32xf32, #tpu.memory_space<vmem>>, vector<16x32xf32>
    %9 = vector.broadcast %7 : vector<1x32xf32> to vector<16x32xf32>
    %10 = arith.mulf %8, %9 : vector<16x32xf32>
    %cst_5 = arith.constant dense<0.000000e+00> : vector<16xf32>
    %11 = vector.multi_reduction <add>, %10, %cst_5 [1] : vector<16x32xf32> to vector<16xf32>
    %12 = vector.shape_cast %11 : vector<16xf32> to vector<16x1xf32>
    %13 = vector.broadcast %0 : f32 to vector<1x32xf32>
    %14 = arith.mulf %13, %7 : vector<1x32xf32>
    %15 = vector.broadcast %12 : vector<16x1xf32> to vector<16x32xf32>
    %16 = vector.broadcast %14 : vector<1x32xf32> to vector<16x32xf32>
    %17 = arith.mulf %15, %16 : vector<16x32xf32>
    %18 = arith.addf %8, %17 : vector<16x32xf32>
    %c0_6 = arith.constant 0 : index
    %c0_7 = arith.constant 0 : index
    %19 = vector.load %arg4[%c0_6, %c0_7] : memref<16x32xf32, #tpu.memory_space<vmem>>, vector<16x32xf32>
    tpu.vector_store %arg4[%c0_6, %c0_7], %18 {strides = array<i32>} : memref<16x32xf32, #tpu.memory_space<vmem>>, vector<16x32xf32>,
    return
  }
  func.func @transform_0(%arg0: i32) -> (i32, i32) {
    %c0_i32 = arith.constant 0 : i32
    %c0_i32_0 = arith.constant 0 : i32
    %c0_i32_1 = arith.constant 0 : i32
    return %c0_i32, %c0_i32_0 : i32, i32
  }
  func.func @transform_1(%arg0: i32) -> (i32, i32) {
    %c0_i32 = arith.constant 0 : i32
    %c0_i32_0 = arith.constant 0 : i32
    %c0_i32_1 = arith.constant 0 : i32
    return %c0_i32, %c0_i32_0 : i32, i32
  }
  func.func @transform_2(%arg0: i32) -> (i32, i32) {
    %c0_i32 = arith.constant 0 : i32
    %c0_i32_0 = arith.constant 0 : i32
    return %arg0, %c0_i32 : i32, i32
  }
  func.func @transform_3(%arg0: i32) -> (i32, i32) {
    %c0_i32 = arith.constant 0 : i32
    %c0_i32_0 = arith.constant 0 : i32
    return %arg0, %c0_i32 : i32, i32
  }
}

</mosaic_0001>

<bundles_post_ra>
// kernel: tpu_custom_call.1
= control target key start
LH: loop header
LB: loop body
LE: loop exit
PB: predicated region body
PF: predicated region fallthrough
CT: control target
= control target key end

     0   :  { %9 = vsyncpa [#allocation4], 0  ;;  %s205_s0 = inlined_call_operand.<no memory space> [shape: f32[1,1], index: 0, kind: input, shape index: {}]   ;;  %s206_s1 = inlined_call_operand.vmem [shape: f32[1,32], index: 1, kind: input, shape index: {}]   ;;  %s207_s2 = inlined_call_operand.hbm [shape: f32[16,32], index: 2, kind: input, shape index: {}, may-alias: {2,3}]   ;;  %s208_s3 = inlined_call_operand.hbm [shape: f32[16,32], index: 3, kind: output, shape index: {}, may-alias: {2,3}]  }
   0x1   :  { %10 = vsyncpa [#allocation5], 0  ;;  %s141_s12 = smov [#allocation3]   ;;  %s93_s16 = scalar_lea.hbm %s207_s2, 256 }
   0x2   :  { %s20_s13 = sshll.u32 %s141_s12, 4  ;;  %p94_p0 = scmp.ne.s32.totalorder %s207_s2, %s93_s16  ;;  %s21_s13 = int_to_ptr.vmem [resolvable:$true] %s20_s13 }
   0x3   :  { %p97_p1 = scmp.lt.u32.totalorder %s93_s16, %s207_s2 }
   0x5   :  { %p99_p2 = pnand %p97_p1, %p94_p0 }
   0x7   :  { %102 = shalt.err (!%p99_p2)
}
   0x8   :  { %s103_s21 = scalar_lea.vmem %s21_s13, 256  ;;  %p108_p4 = scmp.lt.s32.totalorder %s21_s13, %s21_s13 }
   0x9   :  { %p104_p3 = scmp.ne.s32.totalorder %s21_s13, %s103_s21  ;;  %p109_p5 = scmp.lt.s32.totalorder %s103_s21, %s103_s21 }
   0xb   :  { %p110_p6 = por %p109_p5, %p108_p4 }
   0xd   :  { %p111_p7 = pnand %p110_p6, %p104_p3 }
   0xf   :  { %114 = shalt.err (!%p111_p7)
}
  0x10   :  { %s142_s22 = smov 128   ;;  %s143_s23 = smov 8  }
  0x11   :  { %26 = dma.hbm_to_vmem [thread:$0]  %s207_s2, 256, %s21_s13, [#allocation4], %s142_s22, %s142_s22, %s143_s23  }
  0x12   :  { %137 = dma.done.wait [#allocation4], 256  }
  0x13   :  { %138 = vsyncadd [#allocation4], 4294967040  ;;  %v31_v0 = vld [vmem:[%s206_s1] sm:$0x1]  ;;  %vm33_vm0 = vcmask 253952   ;;  %v42_v4 = vlaneseq  ;;  %v56_v8 = vstv %s205_s0  ;;  %v40_v10 = vld [vmem:[#allocation3 + $0x8] sm:$0xff] }
  0x14   :  { %v32_v1 = vmul.f32 %v31_v0, %v31_v0  ;;  %v39_v11 = vld [vmem:[#allocation3] sm:$0xff]  ;;  %vm49_vm1 = vcmask 261120   ;;  %s144_s1 = smov [#allocation6]  }
  0x15   :  { %v43_v5 = vshrl.u32 %v42_v4, 7  ;;  %s75_s2 = sshll.u32 %s144_s1, 4  ;;  %s76_s2 = int_to_ptr.vmem [resolvable:$true] %s75_s2 }
  0x16   :  { %v34_v2 = vsel %vm33_vm0, %v32_v1, 0.0  ;;  %s115_s0 = scalar_lea.vmem %s76_s2, 256  ;;  %p120_p9 = scmp.lt.s32.totalorder %s76_s2, %s76_s2 }
  0x17   :  { %35 = vadd.xlane.f32.xlu0 %v34_v2  ;;  %v44_v6 = vsub.s32 0, %v43_v5  ;;  %p116_p8 = scmp.ne.s32.totalorder %s76_s2, %s115_s0  ;;  %p121_p10 = scmp.lt.s32.totalorder %s115_s0, %s115_s0 }
  0x19   :  { %p122_p11 = por %p121_p10, %p120_p9 }
  0x1b   :  { %p123_p12 = pnand %p122_p11, %p116_p8 }
  0xa4   :  { %v36_v3 = vpop.xlane.xlu0 %35 }
  0xa5   :  { %91 = vrsqrt.f32 %v36_v3 }
  0xaf   :  { %v92_v7 = vpop.eup %91 }
  0xb0   :  { %v38_v9 = vmul.f32 %v92_v7, %v31_v0 }
  0xb2   :  { %v45_v12 = vrot.slane %v38_v9, %v44_v6  ;;  %v57_v13 = vmul.f32 %v56_v8, %v38_v9 }
  0xb4   :  { %v48_v14 = vmul.f32 %v45_v12, %v40_v10  ;;  %v47_v15 = vmul.f32 %v45_v12, %v39_v11  ;;  %v62_v16 = vrot.slane %v57_v13, %v44_v6 }
  0xb6   :  { %v53_v17 = vsel %vm49_vm1, %v48_v14, 0.0  ;;  %v50_v18 = vsel %vm49_vm1, %v47_v15, 0.0 }
  0xb7   :  { %54 = vadd.xlane.f32.xlu1 %v53_v17  ;;  %51 = vadd.xlane.f32.xlu0 %v50_v18 }
 0x144   :  { %v55_v19 = vpop.xlane.xlu1 %54  ;;  %v52_v20 = vpop.xlane.xlu0 %51 }
 0x145   :  { %v65_v21 = vmul.f32 %v62_v16, %v55_v19  ;;  %v64_v22 = vmul.f32 %v62_v16, %v52_v20 }
 0x147   :  { %v67_v23 = vadd.f32 %v65_v21, %v40_v10  ;;  %v66_v24 = vadd.f32 %v64_v22, %v39_v11 }
 0x149   :  { %69 = vst.msk [vmem:[#allocation6 + $0x8] sm:$0xff] %vm49_vm1, %v67_v23  ;;  %68 = vst.msk [vmem:[#allocation6] sm:$0xff] %vm49_vm1, %v66_v24 }
 0x14a   :  { %126 = shalt.err (!%p123_p12)
}
 0x14b   :  { %s127_s5 = scalar_lea.hbm %s208_s3, 256 }
 0x14c   :  { %p128_p13 = scmp.ne.s32.totalorder %s208_s3, %s127_s5  ;;  %p131_p0 = scmp.lt.u32.totalorder %s127_s5, %s208_s3 }
 0x14e   :  { %p133_p1 = pnand %p131_p0, %p128_p13 }
 0x150   :  { %136 = shalt.err (!%p133_p1)
}
 0x151   :  { %81 = dma.vmem_to_hbm [thread:$0]  %s76_s2, 256, %s208_s3, [#allocation5], %s142_s22, %s142_s22, %s143_s23  }
 0x152   :  { %139 = dma.done.wait [#allocation5], 256  }
 0x153   :  { %140 = vsyncadd [#allocation5], 4294967040 }
 0x154   :  { %85 = vsyncpa [#allocation4], 1 }
 0x155   :  { %86 = vsyncpa [#allocation5], 1 }

</bundles_post_ra>
